<compile_context>
chip_gen: v5e
topology: v5e:2x2
jax: 0.10.0
libtpu: 0.0.40
codegen_flags: <defaults>
</compile_context>

<pallas_src>
import functools

import jax
import jax.numpy as jnp
from jax.experimental import pallas as pl
from jax.experimental.pallas import tpu as pltpu


def _forward_loss_kernel(x_ref, w_ref, b_ref, o_ref, *, inv_n):
    # Whole problem resides in VMEM; single (gridless) invocation.
    x = x_ref[...]                      # [S, H]  f32
    w = w_ref[...]                      # [H, H]  f32
    b = b_ref[...]                      # [1, H]  f32
    y = jnp.dot(x, w, preferred_element_type=jnp.float32) + b   # MXU matmul
    # inv_n = 1/(S*H) is a compile-time constant (no runtime divide).
    o_ref[0] = jnp.sum(y * y) * inv_n


@jax.jit
def forward_loss(x, w, b):
    """x: [S, H], w: [H, H], b: [1, H] -> scalar f32 loss = mean((xW+b)^2)."""
    S, H = x.shape
    inv_n = 1.0 / float(S * H)
    kernel = functools.partial(_forward_loss_kernel, inv_n=inv_n)

    out = pl.pallas_call(
        kernel,
        out_shape=jax.ShapeDtypeStruct((1,), jnp.float32),
        in_specs=[
            pl.BlockSpec(memory_space=pltpu.MemorySpace.VMEM),
            pl.BlockSpec(memory_space=pltpu.MemorySpace.VMEM),
            pl.BlockSpec(memory_space=pltpu.MemorySpace.VMEM),
        ],
        out_specs=pl.BlockSpec(memory_space=pltpu.MemorySpace.SMEM),
        cost_estimate=pl.CostEstimate(
            flops=2 * S * H * H + 2 * S * H,     # matmul + bias/square
            bytes_accessed=(S * H + H * H + H + 1) * 4,
            transcendentals=0,
        ),
    )(x, w, b)
    return out[0]                       # squeezed inside the same jit


if __name__ == "__main__":
    key = jax.random.PRNGKey(0)
    k_x, k_w, k_b = jax.random.split(key, 3)

    S, H = 8, 32  # seq=8, hidden=32
    x = jax.random.normal(k_x, (S, H), dtype=jnp.float32)
    # Deterministic parameter init for the concrete inner `model` (Linear(H, H)).
    # Parameters are shaped once at init (hoisted out of the per-step path).
    w = jax.random.normal(k_w, (H, H), dtype=jnp.float32) * 0.05
    b = (jax.random.normal(k_b, (H,), dtype=jnp.float32) * 0.01).reshape(1, H)

    loss = forward_loss(x, w, b)
    jax.block_until_ready(loss)

    # Reference check in plain JAX.
    ref = jnp.mean((x @ w + b) ** 2)
    assert jnp.allclose(loss, ref, rtol=1e-5, atol=1e-5), (loss, ref)

    print("KERNEL_OK")
</pallas_src>

<mosaic_0001>
module attributes {stable_mosaic.version = 11 : i64} {
  func.func @_forward_loss_kernel(%arg0: memref<8x32xf32, #tpu.memory_space<vmem>>, %arg1: memref<32x32xf32, #tpu.memory_space<vmem>>, %arg2: memref<1x32xf32, #tpu.memory_space<vmem>>, %arg3: memref<1xf32, #tpu.memory_space<smem>>) attributes {dimension_semantics = [], scalar_prefetch = 0 : i64, scratch_operands = 0 : i64, tpu.core_type = #tpu.core_type<tc>} {
    %c0 = arith.constant 0 : index
    %c0_0 = arith.constant 0 : index
    %0 = vector.load %arg0[%c0, %c0_0] : memref<8x32xf32, #tpu.memory_space<vmem>>, vector<8x32xf32>
    %c0_1 = arith.constant 0 : index
    %c0_2 = arith.constant 0 : index
    %1 = vector.load %arg1[%c0_1, %c0_2] : memref<32x32xf32, #tpu.memory_space<vmem>>, vector<32x32xf32>
    %c0_3 = arith.constant 0 : index
    %c0_4 = arith.constant 0 : index
    %2 = vector.load %arg2[%c0_3, %c0_4] : memref<1x32xf32, #tpu.memory_space<vmem>>, vector<1x32xf32>
    %cst = arith.constant dense<0.000000e+00> : vector<8x32xf32>
    %3 = tpu.matmul %0, %1, %cst {dimension_numbers = #tpu.dot_dimension_numbers<[1], [0], [0], [1], [0, 0, 1, 1], [], []>} : vector<8x32xf32>, vector<32x32xf32>, vector<8x32xf32> -> vector<8x32xf32>
    %4 = vector.broadcast %2 : vector<1x32xf32> to vector<8x32xf32>
    %5 = arith.addf %3, %4 : vector<8x32xf32>
    %6 = arith.mulf %5, %5 : vector<8x32xf32>
    %7 = vector.shape_cast %6 : vector<8x32xf32> to vector<1x8x32xf32>
    %cst_5 = arith.constant dense<0.000000e+00> : vector<1xf32>
    %8 = vector.multi_reduction <add>, %7, %cst_5 [1, 2] : vector<1x8x32xf32> to vector<1xf32>
    %9 = vector.shape_cast %8 : vector<1xf32> to vector<1x1x1xf32>
    %10 = vector.extract %9[0, 0, 0] : f32 from vector<1x1x1xf32>
    %cst_6 = arith.constant 3.906250e-03 : f32
    %11 = arith.mulf %10, %cst_6 : f32
    %c0_7 = arith.constant 0 : index
    %12 = memref.load %arg3[%c0_7] : memref<1xf32, #tpu.memory_space<smem>>
    memref.store %11, %arg3[%c0_7] : memref<1xf32, #tpu.memory_space<smem>>
    return
  }
}

</mosaic_0001>

<bundles_post_ra>
// kernel: forward_loss.1
= control target key start
LH: loop header
LB: loop body
LE: loop exit
PB: predicated region body
PF: predicated region fallthrough
CT: control target
= control target key end

     0   :  { %8 = vsyncpa [#allocation3], 0  ;;  %s221_s0 = inlined_call_operand.hbm [shape: f32[8,32], index: 0, kind: input, shape index: {}]   ;;  %s222_s1 = inlined_call_operand.hbm [shape: f32[32,32], index: 1, kind: input, shape index: {}]   ;;  %s223_s2 = inlined_call_operand.vmem [shape: f32[1,32], index: 2, kind: input, shape index: {}]   ;;  %s224_s3 = inlined_call_operand.hbm [shape: f32[1], index: 3, kind: output, shape index: {}]  }
   0x1   :  { %9 = vsyncpa [#allocation6], 0 }
   0x2   :  { %10 = vsyncpa [#allocation4], 0  ;;  %s16_s14 = sshll.u32 %s221_s0, 4  ;;  %s184_s15 = smov [#allocation2]   ;;  %s17_s14 = int_to_ptr.hbm [resolvable:$true] %s16_s14 }
   0x3   :  { %s18_s16 = sshll.u32 %s184_s15, 4  ;;  %s26_s19 = sshll.u32 %s222_s1, 4  ;;  %s19_s16 = int_to_ptr.vmem [resolvable:$true] %s18_s16  ;;  %s27_s19 = int_to_ptr.hbm [resolvable:$true] %s26_s19 }
   0x4   :  { %21 = dma.hbm_to_vmem [thread:$0]  %s17_s14, 128, %s19_s16, [#allocation3]  }
   0x5   :  { %s185_s20 = smov [#allocation5]   ;;  %s186_s22 = smov 128  }
   0x6   :  { %s28_s21 = sshll.u32 %s185_s20, 4  ;;  %s187_s23 = smov 8   ;;  %s29_s21 = int_to_ptr.vmem [resolvable:$true] %s28_s21 }
   0x7   :  { %34 = dma.hbm_to_vmem [thread:$0]  %s27_s19, 512, %s29_s21, [#allocation6], %s186_s22, %s186_s22, %s187_s23  }
   0x8   :  { %178 = dma.done.wait [#allocation3], 128  }
   0x9   :  { %179 = vsyncadd [#allocation3], 4294967168 }
   0xa   :  { %180 = dma.done.wait [#allocation6], 512  }
   0xb   :  { %181 = vsyncadd [#allocation6], 4294966784  ;;  %v49_v0 = vld [vmem:[#allocation5 + $0x18] sm:$0xff]  ;;  %v48_v1 = vld [vmem:[#allocation5 + $0x10] sm:$0xff]  ;;  %vm54_vm0 = vcmask 261120   ;;  %s97_s26 = sshll.u32 %s224_s3, 4  ;;  %s98_s26 = int_to_ptr.hbm [resolvable:$true] %s97_s26 }
   0xc   :  { %70 = vmatpush.msra.mxu0 %v49_v0  ;;  %v47_v2 = vld [vmem:[#allocation5 + $0x8] sm:$0xff]  ;;  %v46_v3 = vld [vmem:[#allocation5] sm:$0xff]  ;;  %v45_v4 = vld [vmem:[#allocation2] sm:$0xff]  ;;  %s188_s28 = smov [#allocation7]  }
   0xd   :  { %v117_v5 = vld [vmem:[%s223_s2] ss:$0 sm:$0xff] }
   0xe   :  { %71 = vmatpush.msra.mxu0 %v48_v1 }
  0x10   :  { %72 = vmatpush.msra.mxu0 %v47_v2 }
  0x12   :  { %73 = vmatpush.msra.mxu0 %v46_v3 }
  0x13   :  { %109 = vmatmul.msk.f32.vlgmr.msra.gmra.mxu0 %vm54_vm0, %v45_v4 }
  0x90   :  { %v75_v6 = vpop.f32.mrf.mxu0 }
  0x91   :  { %v76_v7 = vadd.f32 %v117_v5, %v75_v6 }
  0x93   :  { %v78_v8 = vmul.f32 %v76_v7, %v76_v7 }
  0x95   :  { %v79_v9 = vsel %vm54_vm0, %v78_v8, 0.0 }
  0x96   :  { %80 = vadd.xlane.f32.xlu0 %v79_v9 }
 0x109   :  { %v81_v10 = vpop.xlane.xlu0 %80 }
 0x10a   :  { %v82_v11 = vrot.slane %v81_v10, 4 }
 0x10c   :  { %v83_v12 = vadd.f32 %v82_v11, %v81_v10 }
 0x10e   :  { %v84_v13 = vrot.slane %v83_v12, 2 }
 0x110   :  { %v85_v14 = vadd.f32 %v84_v13, %v83_v12 }
 0x112   :  { %v86_v15 = vrot.slane %v85_v14, 1 }
 0x114   :  { %v87_v16 = vadd.f32 %v86_v15, %v85_v14 }
 0x116   :  { %110 = vpush %v87_v16 }
 0x147   :  { %s111_s27 = spop %110 }
 0x148   :  { %s89_s2 = smul.f32 0.00390625, %s111_s27 }
 0x14a   :  { %91 = sst [smem:[#allocation7]] %s89_s2 }
 0x14b   :  { %100 = dma.smem_to_hbm %s188_s28, 16, %s98_s26, [#allocation4]  }
 0x14c   :  { %182 = dma.done.wait [#allocation4], 16  }
 0x14d   :  { %183 = vsyncadd [#allocation4], 4294967280 }
 0x14e   :  { %105 = sfence }
 0x14f   :  { %106 = vsyncpa [#allocation3], 1 }
 0x150   :  { %107 = vsyncpa [#allocation6], 1 }
 0x151   :  { %108 = vsyncpa [#allocation4], 1 }

</bundles_post_ra>
